<compile_context>
chip_gen: v6e
topology: v6e:2x2x1
jax: 0.10.0
libtpu: 0.0.40
codegen_flags: <defaults>
</compile_context>

<pallas_src>
import functools

import jax
import jax.numpy as jnp
from jax import lax
from jax.experimental import pallas as pl
from jax.experimental.pallas import tpu as pltpu

_MIB = 1024 * 1024


def _round_up(x, m):
    return (x + m - 1) // m * m


def _tpu_vmem_bytes():
    """Physical per-core VMEM; conservative fallback if the query fails."""
    try:
        return int(pltpu.get_tpu_info().vmem_capacity_bytes)
    except Exception:
        return 64 * _MIB          # smallest current generation (v7x per-TC)


def _vmem_plan():
    phys = _tpu_vmem_bytes()
    # v5e/v6e (128 MiB physical) -> 64 MiB limit / 56 MiB tile budget
    # v7x (64 MiB per TC)        -> 32 MiB limit / 24 MiB tile budget
    limit = min(96 * _MIB, max(32 * _MIB, phys // 2))
    budget = limit - 8 * _MIB     # headroom for pipeline internals / outputs
    return phys, limit, budget


def _choose_tm(m, d, n_pad, c_item, s_item, budget):
    """Row-tile sizing: biggest TM that fits the generation-aware budget,
    rounded to the streamed dtype's sublane tile, with >= 2 grid steps when
    possible (v7x megacore)."""
    sub = max(8, 32 // max(c_item, 1))        # 8 for f32, 16 bf16, 32 int8/fp8
    style_bytes = 2 * n_pad * d * s_item      # resident style, double-buffered
    # per content row: 2x streamed block + f32 cast + ~8 f32 (TM, N_pad) temps
    per_row = 2 * d * c_item + 4 * d + 8 * n_pad * 4
    avail = budget - style_bytes
    tm = avail // per_row if avail > 0 else sub
    tm = int(max(sub, min(1024, (tm // sub) * sub)))
    tm = min(tm, _round_up(m, sub))
    # Keep at least 2 grid steps so dimension_semantics=("parallel",) can
    # actually shard the row axis across v7x's two TensorCores.
    if tm >= m and m > sub:
        tm = _round_up((m + 1) // 2, sub)
    return max(sub, tm), sub, per_row, style_bytes


def _content_contrastive_kernel(content_ref, style_ref, out_ref, *,
                                b, n, m_rows, temperature, use_const_shift):
    tm = content_ref.shape[0]
    n_pad = style_ref.shape[0]
    i = pl.program_id(0)

    c_in = content_ref[...]                           # (TM, D)    matmul dtype
    s_in = style_ref[...]                             # (N_pad, D) pre-scaled by
                                                      #   rsqrt(||s||^2)/T, padded rows 0

    # MXU: contract last dims directly (no style transpose materialized).
    dots = lax.dot_general(
        c_in, s_in,
        dimension_numbers=(((1,), (1,)), ((), ())),
        preferred_element_type=jnp.float32)           # (TM, N_pad)

    # Content inverse norms via rsqrt (EUP). Style scale + 1/T already folded
    # into s_in by the wrapper -> a single broadcast multiply per logit.
    c32 = c_in.astype(jnp.float32)
    cc = jnp.sum(c32 * c32, axis=-1, keepdims=True)                   # (TM, 1)
    inv_c = lax.rsqrt(jnp.maximum(cc, 1e-16))                         # (TM, 1)
    logits = dots * inv_c                                             # (TM, N_pad)

    # Mask the lane-padded (fake) classes.
    col = lax.broadcasted_iota(jnp.int32, (1, n_pad), 1)              # (1, N_pad)
    logits = jnp.where(col < b, logits, jnp.float32(-1e30))

    # Row-wise log-sum-exp.
    if use_const_shift:
        # |cos|/T <= 1/T, so a compile-time shift keeps exp args <= 0 and
        # skips the per-row max reduction. Masked -1e30 lanes underflow to 0.
        shift = jnp.float32(1.0 / temperature)
        lse = jnp.log(jnp.sum(jnp.exp(logits - shift), axis=-1,
                              keepdims=True)) + shift                 # (TM, 1)
    else:
        row_max = jnp.max(logits, axis=-1, keepdims=True)
        lse = jnp.log(jnp.sum(jnp.exp(logits - row_max), axis=-1,
                              keepdims=True)) + row_max               # (TM, 1)

    # label(row) = row // n realized as compares (no per-element int divide).
    row = lax.broadcasted_iota(jnp.int32, (tm, 1), 0) + i * tm        # global row
    col_lo = col * n                                                  # (1, N_pad)
    pick = (row >= col_lo) & (row < col_lo + n)                       # (TM, N_pad)
    picked = jnp.sum(jnp.where(pick, logits, 0.0), axis=-1,
                     keepdims=True)                                   # (TM, 1)

    # Zero out padded rows and reduce to this block's partial loss.
    row_valid = row < m_rows
    partial = jnp.sum(jnp.where(row_valid, lse - picked, 0.0))

    # Lane/sublane-dense (unmasked) store of the per-block partial.
    out_ref[...] = jnp.broadcast_to(partial, out_ref.shape)


def content_contrastive(content, style, b, n, temperature, *,
                        use_bf16_matmul=False):
    """content: (b*n, D), style: (b, D) -> scalar loss (float32).

    use_bf16_matmul: cast the (pre-scaled) matmul operands to bf16 for full
    MXU rate and half the content HBM bytes; slightly different numerics.
    """
    m, d = content.shape
    nb, d2 = style.shape
    assert m == b * n and nb == b and d == d2
    temperature = float(temperature)

    # ---- Hoisted style normalization: fold rsqrt(||s||^2) and 1/temperature
    # ---- into the style rows once, outside the kernel.
    s32 = style.astype(jnp.float32)
    ss = jnp.sum(s32 * s32, axis=-1, keepdims=True)
    inv_s = lax.rsqrt(jnp.maximum(ss, 1e-16)) * (1.0 / temperature)
    style_scaled = s32 * inv_s                                  # (b, D) f32

    mm_dtype = jnp.bfloat16 if use_bf16_matmul else content.dtype
    content_mm = content.astype(mm_dtype)
    # NOTE: for bf16 inputs / bf16 path the folded scale gets an extra bf16
    # rounding relative to scaling the f32 logits; acceptable for a loss.
    style_mm = style_scaled.astype(mm_dtype)

    c_item = content_mm.dtype.itemsize
    s_item = style_mm.dtype.itemsize

    n_pad = _round_up(b, 128)                        # lane-dense class axis
    phys, limit, budget = _vmem_plan()
    tm, sub, per_row, style_bytes = _choose_tm(m, d, n_pad, c_item, s_item, budget)
    m_pad = _round_up(m, tm)
    grid = m_pad // tm

    # If the resident style block alone blew the budget (huge b*D), raise the
    # scoped-VMEM limit explicitly instead of silently overrunning it.
    out_bytes = grid * 8 * 128 * 4
    est = style_bytes + tm * per_row + out_bytes
    if est + 8 * _MIB > limit:
        limit = min(phys - 8 * _MIB, est + 8 * _MIB)

    content_p = content_mm if m_pad == m else jnp.pad(content_mm,
                                                      ((0, m_pad - m), (0, 0)))
    style_p = style_mm if n_pad == nb else jnp.pad(style_mm,
                                                   ((0, n_pad - nb), (0, 0)))

    kernel = functools.partial(
        _content_contrastive_kernel,
        b=b, n=n, m_rows=m, temperature=temperature,
        use_const_shift=(temperature >= 0.03))

    cost = pl.CostEstimate(
        flops=2 * m_pad * n_pad * d,
        transcendentals=m_pad * n_pad + m_pad,       # exp over logits + rsqrt
        bytes_accessed=m_pad * d * c_item + n_pad * d * s_item + out_bytes)

    partials = pl.pallas_call(
        kernel,
        out_shape=jax.ShapeDtypeStruct((grid, 8, 128), jnp.float32),
        grid=(grid,),
        in_specs=[
            pl.BlockSpec((tm, d), lambda i: (i, 0)),      # streamed content tile
            pl.BlockSpec((n_pad, d), lambda i: (0, 0)),   # resident pre-scaled style
        ],
        out_specs=pl.BlockSpec((1, 8, 128), lambda i: (i, 0, 0)),
        compiler_params=pltpu.CompilerParams(
            dimension_semantics=("parallel",),
            vmem_limit_bytes=int(limit)),
        cost_estimate=cost,
    )(content_p, style_p)

    return jnp.sum(partials[:, 0, 0]) / (n * b)


def _reference(content, style, b, n, temperature):
    c = content.astype(jnp.float32)
    s = style.astype(jnp.float32)
    cn = jnp.linalg.norm(c, axis=-1, keepdims=True)
    sn = jnp.linalg.norm(s, axis=-1, keepdims=True)
    logits = (c @ s.T) / jnp.maximum(cn * sn.T, 1e-8) / temperature
    labels = jnp.repeat(jnp.arange(b), n)
    lse = jax.scipy.special.logsumexp(logits, axis=-1)
    ce = lse - logits[jnp.arange(b * n), labels]
    return jnp.sum(ce) / (n * b)


if __name__ == "__main__":
    b, n, D = 2, 8, 32
    temperature = 0.1

    key = jax.random.PRNGKey(0)
    k_c, k_s = jax.random.split(key)
    content = jax.random.normal(k_c, (b * n, D), dtype=jnp.float32)
    style = jax.random.normal(k_s, (b, D), dtype=jnp.float32)

    loss = content_contrastive(content, style, b, n, temperature)
    loss = jax.block_until_ready(loss)

    ref = _reference(content, style, b, n, temperature)
    assert jnp.allclose(loss, ref, atol=1e-4, rtol=1e-4), (loss, ref)

    print("KERNEL_OK")
</pallas_src>

<mosaic_0001>
module attributes {stable_mosaic.version = 11 : i64} {
  func.func @_content_contrastive_kernel(%arg0: i32, %arg1: memref<8x32xf32, #tpu.memory_space<vmem>>, %arg2: memref<128x32xf32, #tpu.memory_space<vmem>>, %arg3: memref<1x8x128xf32, #tpu.memory_space<vmem>>) attributes {dimension_semantics = [#tpu.dimension_semantics<parallel>], iteration_bounds = array<i64: 2>, scalar_prefetch = 0 : i64, scratch_operands = 0 : i64, tpu.core_type = #tpu.core_type<tc>, window_params = [{transform_indices = @transform_0, window_bounds = array<i64: 8, 32>}, {pipeline_mode = #tpu.pipeline_mode<synchronous>, transform_indices = @transform_1, window_bounds = array<i64: 128, 32>}, {transform_indices = @transform_2, window_bounds = array<i64: 1, 8, 128>}]} {
    %c0 = arith.constant 0 : index
    %c0_0 = arith.constant 0 : index
    %0 = vector.load %arg1[%c0, %c0_0] : memref<8x32xf32, #tpu.memory_space<vmem>>, vector<8x32xf32>
    %c0_1 = arith.constant 0 : index
    %c0_2 = arith.constant 0 : index
    %1 = vector.load %arg2[%c0_1, %c0_2] : memref<128x32xf32, #tpu.memory_space<vmem>>, vector<128x32xf32>
    %cst = arith.constant dense<0.000000e+00> : vector<8x128xf32>
    %2 = tpu.matmul %0, %1, %cst {dimension_numbers = #tpu.dot_dimension_numbers<[1], [1], [0], [0], [0, 0, 1, 0], [], []>} : vector<8x32xf32>, vector<128x32xf32>, vector<8x128xf32> -> vector<8x128xf32>
    %3 = arith.mulf %0, %0 : vector<8x32xf32>
    %cst_3 = arith.constant dense<0.000000e+00> : vector<8xf32>
    %4 = vector.multi_reduction <add>, %3, %cst_3 [1] : vector<8x32xf32> to vector<8xf32>
    %5 = vector.shape_cast %4 : vector<8xf32> to vector<8x1xf32>
    %cst_4 = arith.constant 1.000000e-16 : f32
    %6 = vector.broadcast %cst_4 : f32 to vector<8x1xf32>
    %7 = arith.maximumf %5, %6 : vector<8x1xf32>
    %8 = math.rsqrt %7 : vector<8x1xf32>
    %9 = vector.broadcast %8 : vector<8x1xf32> to vector<8x128xf32>
    %10 = arith.mulf %2, %9 : vector<8x128xf32>
    %11 = tpu.iota {dimensions = array<i32: 1>} : vector<1x128xi32>
    %c2_i32 = arith.constant 2 : i32
    %12 = vector.broadcast %c2_i32 : i32 to vector<1x128xi32>
    %13 = arith.cmpi slt, %11, %12 : vector<1x128xi32>
    %cst_5 = arith.constant -1.000000e+30 : f32
    %14 = vector.shape_cast %13 : vector<1x128xi1> to vector<1x128xi1>
    %15 = vector.broadcast %14 : vector<1x128xi1> to vector<8x128xi1>
    %16 = vector.broadcast %cst_5 : f32 to vector<8x128xf32>
    %17 = arith.select %15, %10, %16 : vector<8x128xi1>, vector<8x128xf32>
    %cst_6 = arith.constant 1.000000e+01 : f32
    %18 = vector.broadcast %cst_6 : f32 to vector<8x128xf32>
    %19 = arith.subf %17, %18 : vector<8x128xf32>
    %20 = math.exp %19 : vector<8x128xf32>
    %cst_7 = arith.constant dense<0.000000e+00> : vector<8xf32>
    %21 = vector.multi_reduction <add>, %20, %cst_7 [1] : vector<8x128xf32> to vector<8xf32>
    %22 = vector.shape_cast %21 : vector<8xf32> to vector<8x1xf32>
    %23 = math.log %22 : vector<8x1xf32>
    %cst_8 = arith.constant 1.000000e+01 : f32
    %24 = vector.broadcast %cst_8 : f32 to vector<8x1xf32>
    %25 = arith.addf %23, %24 : vector<8x1xf32>
    %26 = tpu.iota {dimensions = array<i32: 0>} : vector<8x1xi32>
    %c8_i32 = arith.constant 8 : i32
    %27 = arith.muli %arg0, %c8_i32 : i32
    %28 = vector.broadcast %27 : i32 to vector<8x1xi32>
    %29 = arith.addi %26, %28 : vector<8x1xi32>
    %c8_i32_9 = arith.constant 8 : i32
    %30 = vector.broadcast %c8_i32_9 : i32 to vector<1x128xi32>
    %31 = arith.muli %11, %30 : vector<1x128xi32>
    %32 = vector.broadcast %29 : vector<8x1xi32> to vector<8x128xi32>
    %33 = vector.broadcast %31 : vector<1x128xi32> to vector<8x128xi32>
    %34 = arith.cmpi sge, %32, %33 : vector<8x128xi32>
    %c8_i32_10 = arith.constant 8 : i32
    %35 = vector.broadcast %c8_i32_10 : i32 to vector<1x128xi32>
    %36 = arith.addi %31, %35 : vector<1x128xi32>
    %37 = vector.broadcast %29 : vector<8x1xi32> to vector<8x128xi32>
    %38 = vector.broadcast %36 : vector<1x128xi32> to vector<8x128xi32>
    %39 = arith.cmpi slt, %37, %38 : vector<8x128xi32>
    %40 = arith.andi %34, %39 : vector<8x128xi1>
    %cst_11 = arith.constant 0.000000e+00 : f32
    %41 = vector.broadcast %cst_11 : f32 to vector<8x128xf32>
    %42 = arith.select %40, %17, %41 : vector<8x128xi1>, vector<8x128xf32>
    %cst_12 = arith.constant dense<0.000000e+00> : vector<8xf32>
    %43 = vector.multi_reduction <add>, %42, %cst_12 [1] : vector<8x128xf32> to vector<8xf32>
    %44 = vector.shape_cast %43 : vector<8xf32> to vector<8x1xf32>
    %c16_i32 = arith.constant 16 : i32
    %45 = vector.broadcast %c16_i32 : i32 to vector<8x1xi32>
    %46 = arith.cmpi slt, %29, %45 : vector<8x1xi32>
    %47 = arith.subf %25, %44 : vector<8x1xf32>
    %cst_13 = arith.constant 0.000000e+00 : f32
    %48 = vector.broadcast %cst_13 : f32 to vector<8x1xf32>
    %49 = arith.select %46, %47, %48 : vector<8x1xi1>, vector<8x1xf32>
    %50 = vector.shape_cast %49 : vector<8x1xf32> to vector<1x8x1xf32>
    %cst_14 = arith.constant dense<0.000000e+00> : vector<1xf32>
    %51 = vector.multi_reduction <add>, %50, %cst_14 [1, 2] : vector<1x8x1xf32> to vector<1xf32>
    %52 = vector.shape_cast %51 : vector<1xf32> to vector<1x1x1xf32>
    %53 = vector.extract %52[0, 0, 0] : f32 from vector<1x1x1xf32>
    %54 = vector.broadcast %53 : f32 to vector<1x8x128xf32>
    %c0_15 = arith.constant 0 : index
    %c0_16 = arith.constant 0 : index
    %c0_17 = arith.constant 0 : index
    %55 = vector.load %arg3[%c0_15, %c0_16, %c0_17] : memref<1x8x128xf32, #tpu.memory_space<vmem>>, vector<1x8x128xf32>
    tpu.vector_store %arg3[%c0_15, %c0_16, %c0_17], %54 {strides = array<i32>} : memref<1x8x128xf32, #tpu.memory_space<vmem>>, vector<1x8x128xf32>,
    return
  }
  func.func @transform_0(%arg0: i32) -> (i32, i32) {
    %c0_i32 = arith.constant 0 : i32
    %c0_i32_0 = arith.constant 0 : i32
    return %arg0, %c0_i32 : i32, i32
  }
  func.func @transform_1(%arg0: i32) -> (i32, i32) {
    %c0_i32 = arith.constant 0 : i32
    %c0_i32_0 = arith.constant 0 : i32
    %c0_i32_1 = arith.constant 0 : i32
    return %c0_i32, %c0_i32_0 : i32, i32
  }
  func.func @transform_2(%arg0: i32) -> (i32, i32, i32) {
    %c0_i32 = arith.constant 0 : i32
    %c0_i32_0 = arith.constant 0 : i32
    %c0_i32_1 = arith.constant 0 : i32
    return %arg0, %c0_i32, %c0_i32_0 : i32, i32, i32
  }
}

</mosaic_0001>

<bundles_post_ra>
// kernel: tpu_custom_call.1
= control target key start
LH: loop header
LB: loop body
LE: loop exit
PB: predicated region body
PF: predicated region fallthrough
CT: control target
= control target key end

     0   :  { %7 = vsyncpa [#allocation3], 0  ;;  %s771_s0 = inlined_call_operand.vmem [shape: f32[16,32], index: 0, kind: input, shape index: {}]   ;;  %s772_s1 = inlined_call_operand.vmem [shape: f32[128,32], index: 1, kind: input, shape index: {}]   ;;  %s773_s2 = inlined_call_operand.hbm [shape: f32[2,8,128], index: 2, kind: output, shape index: {}]  }
   0x1   :  { %9 = vsyncpa [#allocation3 + $0x1], 0  ;;  %s611_s9 = smov 0   ;;  %s613_s10 = smov 0  }
   0x2   :  { %s615_s11 = smov 0   ;;  %s617_s12 = smov 0  }
   0x3 LB: > { %s632_s13 = sadd.s32 4294967295, %s591_s12   ;;  %s401_s14 = sadd.s32 4294967294, %s591_s12   ;;  %s591_s12 = sphi %s617_s12, %s779_s12   ;;  %s587_s11 = sphi %s615_s11, %s778_s11   ;;  %s583_s10 = sphi %s613_s10, %s777_s10   ;;  %s579_s9 = sphi %s611_s9, %s776_s9  }
   0x4   : > { %s636_s15 = sadd.s32 1, %s591_s12   ;;  %s69_s16 = sadd.s32 1, %s587_s11 }
   0x5   : > { %s66_s17 = ssub.s32 %s591_s12, %s636_s15  ;;  %p79_p0 = scmp.ne.s32.totalorder %s587_s11, %s583_s10 }
   0x6   : > { %p67_p1 = scmp.eq.s32.totalorder %s66_s17, 0  ;;  %p80_p2 = scmp.eq.s32.totalorder %s632_s13, 1 }
   0x7   : > { %p85_p3 = scmp.ne.s32.totalorder %s583_s10, %s579_s9  ;;  %p86_p4 = scmp.eq.s32.totalorder %s401_s14, 1 }
   0x8   : > { %s647_s18 = scalar_select %p67_p1, %s587_s11, %s69_s16  }
   0x9   : > { %p649_p5 = por %p80_p2, %p79_p0  ;;  %p653_p6 = por %p86_p4, %p85_p3 }
   0xa   : > { %p404_p7 = scmp.ge.s32.totalorder %s591_s12, 1  ;;  %p114_p8 = scmp.lt.s32.totalorder %s591_s12, 3 }
   0xc   : > { %p115_p9 = pnand %p404_p7, %p114_p8 }
   0xd   : > { %p135_p10 = scmp.lt.s32.totalorder (!%p115_p9), %s632_s13, 1  ;;  %s425_s17 = sshll.u32 (!%p115_p9), %s632_s13, 3 }
   0xe   : > { %118 = sbr.rel (%p115_p9) target bundleno = 672 (0x2a0), region = 28  ;;  %s132_s21 = sand.u32 (!%p115_p9), 1, %s583_s10  }
   0xf   : > { %s405_s22 = sshll.u32 (!%p115_p9), %s132_s21, 3  ;;  %s329_s30 = scalar_lea.sflag (!%p115_p9), [#allocation3], %s132_s21 }
  0x10   : > { %s134_s23 = scalar_lea.vmem (!%p115_p9), [#allocation2], %s405_s22  ;;  %s595_s4 = smov (!%p115_p9), [#allocation2]  }
  0x11   : > { %s342_s24 = sshll.u32 (!%p115_p9), %s134_s23, 4  ;;  %s733_s24 = int_to_ptr.vmem [resolvable:$true] %s342_s24 }
  0x12   : > { %s531_s3 = scalar_lea.vmem (!%p115_p9), %s733_s24, 128 }
  0x13   : > { %v155_v0 = vld [vmem:[%s772_s1 + $0x78] sm:$0xff]  ;;  %vm156_vm0 = vcmask 261120   ;;  %v593_v1 = vmov 0.0   ;;  %vm594_vm1 = vmmov 0   ;;  %v154_v2 = vld [vmem:[%s772_s1 + $0x70] sm:$0xff]  ;;  %s136_s25 = scalar_select %p135_p10, %s632_s13, 1  ;;  %v285_v22 = vlaneseq }
  0x14   : > { %447 = vmatprep.subr.mxu0 %v593_v1  ;;  %479 = vmatprep.mubr.msk.f32.mxu0 %vm594_vm1, %v593_v1  ;;  %v153_v3 = vld [vmem:[%s772_s1 + $0x68] sm:$0xff]  ;;  %v152_v7 = vld [vmem:[%s772_s1 + $0x60] sm:$0xff]  ;;  %v151_v8 = vld [vmem:[%s772_s1 + $0x58] sm:$0xff]  ;;  %v302_v26 = vstv %s425_s17  ;;  %vm315_vm7 = vcmask 7168   ;;  %p532_p11 = scmp.ne.s32.totalorder %s733_s24, %s531_s3 }
  0x15   : > { %448 = vmatpush3.xpose.msk.msra.mxu0 %vm156_vm0, %v155_v0  ;;  %s406_s26 = sshll.u32 %s136_s25, 3  ;;  %v150_v9 = vld [vmem:[%s772_s1 + $0x50] sm:$0xff]  ;;  %v149_v10 = vld [vmem:[%s772_s1 + $0x48] sm:$0xff]  ;;  %v148_v11 = vld [vmem:[%s772_s1 + $0x40] sm:$0xff]  ;;  %v286_v23 = vand.u32 127, %v285_v22  ;;  %v300_v24 = vshrl.u32 %v285_v22, 7 }
  0x16   : > { %449 = vmatprep.subr.mxu0 %v593_v1  ;;  %s138_s29 = scalar_lea.vmem %s771_s0, %s406_s26  ;;  %v147_v12 = vld [vmem:[%s772_s1 + $0x38] sm:$0xff]  ;;  %v146_v13 = vld [vmem:[%s772_s1 + $0x30] sm:$0xff]  ;;  %v145_v14 = vld [vmem:[%s772_s1 + $0x28] sm:$0xff]  ;;  %s427_s25 = sshll.u32 %s632_s13, 7 }
  0x17   : > { %v139_v4 = vld [vmem:[%s138_s29] sm:$0xff]  ;;  %v143_v16 = vld [vmem:[%s772_s1 + $0x18] sm:$0xff]  ;;  %v142_v17 = vld [vmem:[%s772_s1 + $0x10] sm:$0xff]  ;;  %v304_v25 = vmul.u32 8, %v286_v23  ;;  %v303_v27 = vadd.s32 %v302_v26, %v300_v24  ;;  %vm287_vm4 = vcmp.lt.s32.totalorder %v286_v23, 2  ;;  %s340_s29 = scalar_lea.hbm %s773_s2, %s427_s25  ;;  %p533_p12 = pnand %p532_p11, %p649_p5 }
  0x18   : > { %v278_v5 = vmul.f32 %v139_v4, %v139_v4  ;;  %v144_v15 = vld [vmem:[%s772_s1 + $0x20] sm:$0xff]  ;;  %v141_v18 = vld [vmem:[%s772_s1 + $0x8] sm:$0xff]  ;;  %s535_s13 = sshll.u32 %s595_s4, 4  ;;  %s536_s13 = int_to_ptr.vmem [resolvable:$false] %s535_s13 }
  0x19   : > { %450 = vmatpush3.xpose.msk.msra.mxu0 %vm156_vm0, %v154_v2  ;;  %v140_v19 = vld [vmem:[%s772_s1] sm:$0xff]  ;;  %v306_v28 = vadd.s32 8, %v304_v25  ;;  %vm305_vm2 = vcmp.ge.s32.totalorder %v303_v27, %v304_v25  ;;  %vm312_vm6 = vcmp.lt.s32.totalorder %v303_v27, 16  ;;  %p534_p13 = pneg %p533_p12  ;;  %s537_s5 = scalar_lea.vmem %s536_s13, 256 }
  0x1a   : > { %451 = vmatprep.subr.mxu0 %v593_v1  ;;  %v279_v6 = vsel %vm156_vm0, %v278_v5, 0.0  ;;  %p538_p0 = scmp.lt.s32.totalorder %s733_s24, %s536_s13  ;;  %p539_p1 = scmp.lt.s32.totalorder %s537_s5, %s531_s3 }
  0x1b   : > { %280 = vadd.xlane.f32.xlu0 %v279_v6  ;;  %vm307_vm3 = vcmp.lt.s32.totalorder %v303_v27, %v306_v28 }
  0x1c   : > { %vm308_vm5 = vmand %vm305_vm2, %vm307_vm3  ;;  %p540_p2 = por %p539_p1, %p538_p0 }
  0x1d   : > { %452 = vmatpush3.xpose.msk.msra.mxu0 %vm156_vm0, %v153_v3 }
  0x1e   : > { %453 = vmatprep.subr.mxu0 %v593_v1  ;;  %p541_p3 = pnand %p540_p2, %p534_p13 }
  0x21   : > { %454 = vmatpush3.xpose.msk.msra.mxu0 %vm156_vm0, %v152_v7 }
  0x22   : > { %455 = vmatprep.subr.mxu0 %v593_v1 }
  0x25   : > { %456 = vmatpush3.xpose.msk.msra.mxu0 %vm156_vm0, %v151_v8 }
  0x26   : > { %457 = vmatprep.subr.mxu0 %v593_v1 }
  0x29   : > { %458 = vmatpush3.xpose.msk.msra.mxu0 %vm156_vm0, %v150_v9 }
  0x2a   : > { %459 = vmatprep.subr.mxu0 %v593_v1 }
  0x2d   : > { %460 = vmatpush3.xpose.msk.msra.mxu0 %vm156_vm0, %v149_v10 }
  0x2e   : > { %461 = vmatprep.subr.mxu0 %v593_v1 }
  0x31   : > { %462 = vmatpush3.xpose.msk.msra.mxu0 %vm156_vm0, %v148_v11 }
  0x32   : > { %463 = vmatprep.subr.mxu0 %v593_v1 }
  0x35   : > { %464 = vmatpush3.xpose.msk.msra.mxu0 %vm156_vm0, %v147_v12 }
  0x36   : > { %465 = vmatprep.subr.mxu0 %v593_v1 }
  0x39   : > { %466 = vmatpush3.xpose.msk.msra.mxu0 %vm156_vm0, %v146_v13 }
  0x3a   : > { %467 = vmatprep.subr.mxu0 %v593_v1 }
  0x3d   : > { %468 = vmatpush3.xpose.msk.msra.mxu0 %vm156_vm0, %v145_v14 }
  0x3e   : > { %469 = vmatprep.subr.mxu0 %v593_v1 }
  0x41   : > { %470 = vmatpush3.xpose.msk.msra.mxu0 %vm156_vm0, %v144_v15 }
  0x42   : > { %471 = vmatprep.subr.mxu0 %v593_v1 }
  0x45   : > { %472 = vmatpush3.xpose.msk.msra.mxu0 %vm156_vm0, %v143_v16 }
  0x46   : > { %473 = vmatprep.subr.mxu0 %v593_v1 }
  0x49   : > { %474 = vmatpush3.xpose.msk.msra.mxu0 %vm156_vm0, %v142_v17 }
  0x4a   : > { %475 = vmatprep.subr.mxu0 %v593_v1 }
  0x4d   : > { %476 = vmatpush3.xpose.msk.msra.mxu0 %vm156_vm0, %v141_v18 }
  0x4e   : > { %477 = vmatprep.subr.mxu0 %v593_v1 }
  0x51   : > { %478 = vmatpush3.xpose.msk.msra.mxu0 %vm156_vm0, %v140_v19 }
  0x54   : > { %480 = vmatmul.mubr.msk.f32.vlgmr.msra.gmra.mxu0 %vm156_vm0, %v139_v4 }
  0xa4   : > { %v281_v20 = vpop.xlane.xlu0 %280 }
  0xa5   : > { %v282_v21 = vmax.f32 %v281_v20, 1e-16 }
  0xa7   : > { %525 = vrsqrt.f32 %v282_v21 }
  0xb4   : > { %v526_v29 = vpop.eup %525 }
 0x114   : > { %v274_v30 = vpop.f32.mrf.mxu0 }
 0x115   : > { %v284_v31 = vmul.f32 %v526_v29, %v274_v30 }
 0x116   : > { %v481_v32 = vpop.f32.mrf.mxu0 }
 0x117   : > { %v290_v33 = vsel %vm287_vm4, %v284_v31, -1e+30 }
 0x118   : > { %v309_v34 = vsel %vm308_vm5, %v290_v33, 0.0  ;;  %v424_v35 = vadd.f32 -10.0, %v290_v33 }
 0x119   : > { %310 = vadd.xlane.f32.xlu1 %v309_v34 }
 0x11a   : > { %v292_v36 = vmul.f32 1.442695, %v424_v35 }
 0x11c   : > { %527 = vpow2.f32 %v292_v36 }
 0x129   : > { %v528_v37 = vpop.eup %527 }
 0x12a   : > { %294 = vadd.xlane.f32.xlu0 %v528_v37 }
 0x1a2   : > { %v311_v42 = vpop.xlane.xlu1 %310 }
 0x1b3   : > { %v295_v38 = vpop.xlane.xlu0 %294 }
 0x1b4   : > { %529 = vlog2.f32 %v295_v38 }
 0x1c1   : > { %v530_v39 = vpop.eup %529 }
 0x1c2   : > { %v297_v40 = vmul.f32 0.6931472, %v530_v39 }
 0x1c4   : > { %v298_v41 = vadd.f32 10.0, %v297_v40 }
 0x1c6   : > { %v313_v43 = vsub.f32 %v298_v41, %v311_v42 }
 0x1c8   : > { %v314_v44 = vsel %vm312_vm6, %v313_v43, 0.0 }
 0x1c9   : > { %v316_v45 = vsel %vm315_vm7, %v314_v44, 0.0 }
 0x1ca   : > { %317 = vadd.xlane.f32.xlu1 %v316_v45 }
 0x253   : > { %v318_v46 = vpop.xlane.xlu1 %317 }
 0x254   : > { %v319_v47 = vrot.slane %v318_v46, 4 }
 0x256   : > { %v320_v48 = vadd.f32 %v319_v47, %v318_v46 }
 0x258   : > { %v321_v49 = vrot.slane %v320_v48, 2 }
 0x25a   : > { %v322_v50 = vadd.f32 %v321_v49, %v320_v48 }
 0x25c   : > { %v323_v51 = vrot.slane %v322_v50, 1 }
 0x25e   : > { %v324_v52 = vadd.f32 %v323_v51, %v322_v50 }
 0x260   : > { %482 = vpush %v324_v52 }
 0x291   : > { %s483_s26 = spop %482 }
 0x292   : > { %v326_v53 = vstv %s483_s26 }
 0x293   : > { %327 = vst [vmem:[%s134_s23] sm:$0xff] %v326_v53 }
 0x294   : > { %544 = shalt.err (!%p541_p3)
}
 0x295   : > { %s545_s6 = scalar_lea.hbm %s340_s29, 128  ;;  %s549_s14 = scalar_lea.hbm %s773_s2, 256 }
 0x296   : > { %p546_p4 = scmp.ne.s32.totalorder %s340_s29, %s545_s6  ;;  %p550_p9 = scmp.lt.s32.totalorder %s340_s29, %s773_s2 }
 0x297   : > { %p551_p10 = scmp.lt.s32.totalorder %s549_s14, %s545_s6 }
 0x298   : > { %p547_p7 = pnand %p546_p4, %p649_p5 }
 0x299   : > { %p552_p11 = por %p551_p10, %p550_p9 }
 0x29a   : > { %p548_p8 = pneg %p547_p7 }
 0x29c   : > { %p553_p12 = pnand %p552_p11, %p548_p8 }
 0x29e   : > { %556 = shalt.err (!%p553_p12)
}
 0x29f   : > { %484 = dma.vmem_to_hbm [thread:$0]  (%p649_p5), %s733_s24, 128, %s340_s29, %s329_s30  }
 0x2a0 PF: > { %p490_p13 = scmp.ge.s32.totalorder %s591_s12, 2  ;;  %s354_s21 = sand.u32 1, %s579_s9  }
 0x2a1   : > { %s355_s22 = scalar_lea.sflag [#allocation3], %s354_s21 }
 0x2a2   : > { %p487_p0 = pnand %p490_p13, %p653_p6 }
 0x2a4   : > { %p488_p1 = pneg %p487_p0 }
 0x2a6   : > { %574 = dma.done.wait (%p488_p1), %s355_s22, 128  }
 0x2a7   : > { %576 = vsyncadd (%p488_p1), %s355_s22, 4294967168  ;;  %p12_p2 = scmp.ge.s32.totalorder %s636_s15, 4   ;;  %s776_s9 = smov %s583_s10 }
 0x2a8   : > { %s777_s10 = smov %s587_s11  ;;  %s778_s11 = smov %s647_s18 }
 0x2a9   : > { %s779_s12 = smov %s636_s15  ;;  %14 = sbr.rel (!%p12_p2) target bundleno = 3 (0x3), region = 63 }
 0x2ae   :  { %360 = vsyncpa [#allocation3], 1 }
 0x2af   :  { %362 = vsyncpa [#allocation3 + $0x1], 1 }

</bundles_post_ra>
